<compile_context>
chip_gen: v5e
topology: v5e:2x2
jax: 0.10.0
libtpu: 0.0.40
codegen_flags: <defaults>
</compile_context>

<pallas_src>
import jax
import jax.numpy as jnp
from jax.experimental import pallas as pl
from jax.experimental.pallas import tpu as pltpu

LANE = 128
SUBLANE = 8


def mlp_kernel(x_ref, w1_ref, b1_ref, w2_ref, b2_ref, o_ref):
    # fc1: cast the f32 x tile to bf16 on the VPU, then f32-accumulated MXU matmul.
    x_bf = x_ref[...].astype(jnp.bfloat16)            # [tile_b, F]
    h = jnp.dot(x_bf, w1_ref[...], preferred_element_type=jnp.float32)
    h = jnp.maximum(h + b1_ref[...], 0.0)             # f32 bias add + ReLU (v5e-safe epilogue)
    # TODO(synk): Dropout(0.3) is identity in inference mode (PyTorch eval semantics);
    # training-mode masking (pltpu.prng_seed + stateful_bernoulli) intentionally not applied.
    # fc2: back to bf16 for a native-MXU matmul, accumulate in f32.
    out = jnp.dot(h.astype(jnp.bfloat16), w2_ref[...],
                  preferred_element_type=jnp.float32)
    out = out + b2_ref[...]
    o_ref[...] = out.astype(o_ref.dtype)              # lane-dense (C padded to 128) bf16 store


def prepare_params(w1, b1, w2, b2):
    """One-time parameter prep (do this at model load, not per call).

    w1: [F, H], b1: [H], w2: [H, C], b2: [C]  (weights pre-transposed vs nn.Linear).
    Returns bf16 weights, f32 2D biases, with the class dim zero-padded to a multiple of 128.
    """
    H = w1.shape[1]
    C = w2.shape[1]
    c_pad = ((C + LANE - 1) // LANE) * LANE

    w1_bf = w1.astype(jnp.bfloat16)
    b1_2d = b1.reshape(1, H).astype(jnp.float32)
    w2_p = jnp.zeros((H, c_pad), jnp.bfloat16).at[:, :C].set(w2.astype(jnp.bfloat16))
    b2_p = jnp.zeros((1, c_pad), jnp.float32).at[:, :C].set(
        b2.reshape(1, C).astype(jnp.float32))
    return w1_bf, b1_2d, w2_p, b2_p, C


def mental_health_classifier_forward(x, w1_bf, b1_2d, w2_p, b2_p, num_classes,
                                     *, tile_b=1024):
    """x: [B, F] f32; prepared params from prepare_params()  ->  logits [B, C] f32."""
    B, F = x.shape
    H = w1_bf.shape[1]
    c_pad = w2_p.shape[1]

    # Sublane-round the batch only (<=7 extra rows; no full-batch pad copy of x).
    b_pad = ((B + SUBLANE - 1) // SUBLANE) * SUBLANE
    x_in = x if b_pad == B else jnp.zeros((b_pad, F), x.dtype).at[:B].set(x)

    # Tile selection:
    #   - start from the requested tile_b (default 1024, amortizes per-step overhead),
    #   - cap so the grid has >=2 steps when the batch allows it (v7x: both TCs get work),
    #   - shrink to the largest multiple-of-8 divisor of b_pad so no pad copy is needed.
    desired = min(tile_b, b_pad)
    if b_pad >= 2 * SUBLANE:
        half = (((b_pad + 1) // 2) + SUBLANE - 1) // SUBLANE * SUBLANE
        desired = min(desired, half)
    desired = max(SUBLANE, (desired // SUBLANE) * SUBLANE)
    tb = desired
    while b_pad % tb != 0:
        tb -= SUBLANE
    grid = (b_pad // tb,)

    out_padded = pl.pallas_call(
        mlp_kernel,
        out_shape=jax.ShapeDtypeStruct((b_pad, c_pad), jnp.bfloat16),
        grid=grid,
        in_specs=[
            pl.BlockSpec((tb, F), lambda i: (i, 0)),       # x streamed per batch tile (f32)
            pl.BlockSpec((F, H), lambda i: (0, 0)),        # weights pinned in VMEM
            pl.BlockSpec((1, H), lambda i: (0, 0)),
            pl.BlockSpec((H, c_pad), lambda i: (0, 0)),
            pl.BlockSpec((1, c_pad), lambda i: (0, 0)),
        ],
        out_specs=pl.BlockSpec((tb, c_pad), lambda i: (i, 0)),
        compiler_params=pltpu.CompilerParams(
            dimension_semantics=("parallel",)),
    )(x_in, w1_bf, b1_2d, w2_p, b2_p)

    # Slice away batch padding + the padded (all-zero) logit columns; return f32 logits.
    return out_padded[:B, :num_classes].astype(jnp.float32)


def reference_forward(x, w1, b1, w2, b2):
    # Same bf16-operand / f32-accumulate math (incl. bf16 output rounding) in plain JAX.
    h = jnp.dot(x.astype(jnp.bfloat16), w1.astype(jnp.bfloat16),
                preferred_element_type=jnp.float32)
    h = jnp.maximum(h + b1.reshape(1, -1), 0.0)
    out = jnp.dot(h.astype(jnp.bfloat16), w2.astype(jnp.bfloat16),
                  preferred_element_type=jnp.float32)
    out = out + b2.reshape(1, -1)
    return out.astype(jnp.bfloat16).astype(jnp.float32)


if __name__ == "__main__":
    # Small, module-consistent shapes: batch=8, input_size=256, hidden=128, classes=3.
    batch, input_size, hidden_size, num_classes = 8, 256, 128, 3

    key = jax.random.PRNGKey(0)
    kx, kw1, kb1, kw2, kb2 = jax.random.split(key, 5)

    x = jax.random.normal(kx, (batch, input_size), dtype=jnp.float32)

    # Deterministic synthetic parameters (nn.Linear shapes, stored pre-transposed [in, out]).
    w1 = jax.random.normal(kw1, (input_size, hidden_size), dtype=jnp.float32) * 0.02
    b1 = jax.random.normal(kb1, (hidden_size,), dtype=jnp.float32) * 0.02
    w2 = jax.random.normal(kw2, (hidden_size, num_classes), dtype=jnp.float32) * 0.02
    b2 = jax.random.normal(kb2, (num_classes,), dtype=jnp.float32) * 0.02

    # One-time parameter prep (hoisted out of the per-call path).
    w1_bf, b1_2d, w2_p, b2_p, C = prepare_params(w1, b1, w2, b2)

    out = mental_health_classifier_forward(x, w1_bf, b1_2d, w2_p, b2_p, C)
    out = jax.block_until_ready(out)

    ref = reference_forward(x, w1, b1, w2, b2)
    assert out.shape == (batch, num_classes)
    assert jnp.allclose(out, ref, atol=2e-3, rtol=2e-2), "mismatch vs. reference"

    print("KERNEL_OK")
</pallas_src>

<mosaic_0001>
module attributes {stable_mosaic.version = 11 : i64} {
  func.func @mlp_kernel(%arg0: i32, %arg1: memref<8x256xf32, #tpu.memory_space<vmem>>, %arg2: memref<256x128xbf16, #tpu.memory_space<vmem>>, %arg3: memref<1x128xf32, #tpu.memory_space<vmem>>, %arg4: memref<128x128xbf16, #tpu.memory_space<vmem>>, %arg5: memref<1x128xf32, #tpu.memory_space<vmem>>, %arg6: memref<8x128xbf16, #tpu.memory_space<vmem>>) attributes {dimension_semantics = [#tpu.dimension_semantics<parallel>], iteration_bounds = array<i64: 1>, scalar_prefetch = 0 : i64, scratch_operands = 0 : i64, tpu.core_type = #tpu.core_type<tc>, window_params = [{transform_indices = @transform_0, window_bounds = array<i64: 8, 256>}, {pipeline_mode = #tpu.pipeline_mode<synchronous>, transform_indices = @transform_1, window_bounds = array<i64: 256, 128>}, {pipeline_mode = #tpu.pipeline_mode<synchronous>, transform_indices = @transform_2, window_bounds = array<i64: 1, 128>}, {pipeline_mode = #tpu.pipeline_mode<synchronous>, transform_indices = @transform_3, window_bounds = array<i64: 128, 128>}, {pipeline_mode = #tpu.pipeline_mode<synchronous>, transform_indices = @transform_4, window_bounds = array<i64: 1, 128>}, {transform_indices = @transform_5, window_bounds = array<i64: 8, 128>}]} {
    %c0 = arith.constant 0 : index
    %c0_0 = arith.constant 0 : index
    %0 = vector.load %arg1[%c0, %c0_0] : memref<8x256xf32, #tpu.memory_space<vmem>>, vector<8x256xf32>
    %1 = arith.truncf %0 : vector<8x256xf32> to vector<8x256xbf16>
    %c0_1 = arith.constant 0 : index
    %c0_2 = arith.constant 0 : index
    %2 = vector.load %arg2[%c0_1, %c0_2] : memref<256x128xbf16, #tpu.memory_space<vmem>>, vector<256x128xbf16>
    %cst = arith.constant dense<0.000000e+00> : vector<8x128xf32>
    %3 = tpu.matmul %1, %2, %cst {dimension_numbers = #tpu.dot_dimension_numbers<[1], [0], [0], [1], [0, 0, 1, 1], [], []>} : vector<8x256xbf16>, vector<256x128xbf16>, vector<8x128xf32> -> vector<8x128xf32>
    %c0_3 = arith.constant 0 : index
    %c0_4 = arith.constant 0 : index
    %4 = vector.load %arg3[%c0_3, %c0_4] : memref<1x128xf32, #tpu.memory_space<vmem>>, vector<1x128xf32>
    %5 = vector.broadcast %4 : vector<1x128xf32> to vector<8x128xf32>
    %6 = arith.addf %3, %5 : vector<8x128xf32>
    %cst_5 = arith.constant 0.000000e+00 : f32
    %7 = vector.broadcast %cst_5 : f32 to vector<8x128xf32>
    %8 = arith.maximumf %6, %7 : vector<8x128xf32>
    %9 = arith.truncf %8 : vector<8x128xf32> to vector<8x128xbf16>
    %c0_6 = arith.constant 0 : index
    %c0_7 = arith.constant 0 : index
    %10 = vector.load %arg4[%c0_6, %c0_7] : memref<128x128xbf16, #tpu.memory_space<vmem>>, vector<128x128xbf16>
    %cst_8 = arith.constant dense<0.000000e+00> : vector<8x128xf32>
    %11 = tpu.matmul %9, %10, %cst_8 {dimension_numbers = #tpu.dot_dimension_numbers<[1], [0], [0], [1], [0, 0, 1, 1], [], []>} : vector<8x128xbf16>, vector<128x128xbf16>, vector<8x128xf32> -> vector<8x128xf32>
    %c0_9 = arith.constant 0 : index
    %c0_10 = arith.constant 0 : index
    %12 = vector.load %arg5[%c0_9, %c0_10] : memref<1x128xf32, #tpu.memory_space<vmem>>, vector<1x128xf32>
    %13 = vector.broadcast %12 : vector<1x128xf32> to vector<8x128xf32>
    %14 = arith.addf %11, %13 : vector<8x128xf32>
    %15 = arith.truncf %14 : vector<8x128xf32> to vector<8x128xbf16>
    %c0_11 = arith.constant 0 : index
    %c0_12 = arith.constant 0 : index
    %16 = vector.load %arg6[%c0_11, %c0_12] : memref<8x128xbf16, #tpu.memory_space<vmem>>, vector<8x128xbf16>
    tpu.vector_store %arg6[%c0_11, %c0_12], %15 {strides = array<i32>} : memref<8x128xbf16, #tpu.memory_space<vmem>>, vector<8x128xbf16>,
    return
  }
  func.func @transform_0(%arg0: i32) -> (i32, i32) {
    %c0_i32 = arith.constant 0 : i32
    %c0_i32_0 = arith.constant 0 : i32
    return %arg0, %c0_i32 : i32, i32
  }
  func.func @transform_1(%arg0: i32) -> (i32, i32) {
    %c0_i32 = arith.constant 0 : i32
    %c0_i32_0 = arith.constant 0 : i32
    %c0_i32_1 = arith.constant 0 : i32
    return %c0_i32, %c0_i32_0 : i32, i32
  }
  func.func @transform_2(%arg0: i32) -> (i32, i32) {
    %c0_i32 = arith.constant 0 : i32
    %c0_i32_0 = arith.constant 0 : i32
    %c0_i32_1 = arith.constant 0 : i32
    return %c0_i32, %c0_i32_0 : i32, i32
  }
  func.func @transform_3(%arg0: i32) -> (i32, i32) {
    %c0_i32 = arith.constant 0 : i32
    %c0_i32_0 = arith.constant 0 : i32
    %c0_i32_1 = arith.constant 0 : i32
    return %c0_i32, %c0_i32_0 : i32, i32
  }
  func.func @transform_4(%arg0: i32) -> (i32, i32) {
    %c0_i32 = arith.constant 0 : i32
    %c0_i32_0 = arith.constant 0 : i32
    %c0_i32_1 = arith.constant 0 : i32
    return %c0_i32, %c0_i32_0 : i32, i32
  }
  func.func @transform_5(%arg0: i32) -> (i32, i32) {
    %c0_i32 = arith.constant 0 : i32
    %c0_i32_0 = arith.constant 0 : i32
    return %arg0, %c0_i32 : i32, i32
  }
}

</mosaic_0001>

<bundles_post_ra>
// kernel: tpu_custom_call.1
= control target key start
LH: loop header
LB: loop body
LE: loop exit
PB: predicated region body
PF: predicated region fallthrough
CT: control target
= control target key end

     0   :  { %10 = vsyncpa [#allocation3], 0  ;;  %s615_s0 = inlined_call_operand.hbm [shape: f32[8,256], index: 0, kind: input, shape index: {}]   ;;  %s616_s1 = inlined_call_operand.hbm [shape: bf16[256,128], index: 1, kind: input, shape index: {}]   ;;  %s617_s2 = inlined_call_operand.vmem [shape: f32[1,128], index: 2, kind: input, shape index: {}]   ;;  %s618_s3 = inlined_call_operand.hbm [shape: bf16[128,128], index: 3, kind: input, shape index: {}]   ;;  %s619_s4 = inlined_call_operand.vmem [shape: f32[1,128], index: 4, kind: input, shape index: {}]   ;;  %s620_s5 = inlined_call_operand.hbm [shape: bf16[8,128], index: 5, kind: output, shape index: {}]  }
   0x1   :  { %11 = vsyncpa [#allocation6], 0  ;;  %s28_s20 = sshll.u32 %s616_s1, 4  ;;  %s29_s20 = int_to_ptr.hbm [resolvable:$true] %s28_s20 }
   0x2   :  { %12 = vsyncpa [#allocation4], 0  ;;  %s561_s21 = smov [#allocation5]   ;;  %s18_s25 = sshll.u32 %s615_s0, 4  ;;  %s19_s25 = int_to_ptr.hbm [resolvable:$true] %s18_s25 }
   0x3   :  { %s30_s22 = sshll.u32 %s561_s21, 4  ;;  %s562_s26 = smov 64   ;;  %s31_s22 = int_to_ptr.vmem [resolvable:$true] %s30_s22 }
   0x4   :  { %s563_s27 = smov 4   ;;  %s564_s28 = smov [#allocation2]  }
   0x5   :  { %36 = dma.hbm_to_vmem [thread:$0]  %s29_s20, 2048, %s31_s22, [#allocation6], %s562_s26, %s562_s26, %s563_s27  }
   0x6   :  { %s20_s29 = sshll.u32 %s564_s28, 4  ;;  %s43_s7 = sshll.u32 %s618_s3, 4  ;;  %s21_s29 = int_to_ptr.vmem [resolvable:$true] %s20_s29  ;;  %s44_s7 = int_to_ptr.hbm [resolvable:$true] %s43_s7 }
   0x7   :  { %23 = dma.hbm_to_vmem [thread:$0]  %s19_s25, 256, %s21_s29, [#allocation3]  }
   0x8   :  { %s565_s1 = smov [#allocation7]  }
   0x9   :  { %s45_s8 = sshll.u32 %s565_s1, 4  ;;  %s46_s8 = int_to_ptr.vmem [resolvable:$true] %s45_s8 }
   0xa   :  { %51 = dma.hbm_to_vmem [thread:$0]  %s44_s7, 1024, %s46_s8, [#allocation6], %s562_s26, %s562_s26, %s563_s27  }
   0xb   :  { %555 = dma.done.wait [#allocation3], 256  }
   0xc   :  { %556 = vsyncadd [#allocation3], 4294967040 }
   0xd   :  { %557 = dma.done.wait [#allocation6], 3072  }
   0xe   :  { %558 = vsyncadd [#allocation6], 4294964224  ;;  %v434_v0 = vld [vmem:[#allocation5 + $0x38] sm:$0xff]  ;;  %v433_v2 = vld [vmem:[#allocation5 + $0x30] sm:$0xff]  ;;  %s566_s11 = smov [#allocation8]  }
   0xf   :  { %v442_v1 = vld [vmem:[#allocation5 + $0x78] sm:$0xff]  ;;  %202 = vmatpush.bf16.msra.mxu0 %v434_v0  ;;  %v441_v3 = vld [vmem:[#allocation5 + $0x70] sm:$0xff]  ;;  %v432_v4 = vld [vmem:[#allocation5 + $0x28] sm:$0xff]  ;;  %s318_s12 = sshll.u32 %s566_s11, 4  ;;  %s319_s12 = int_to_ptr.vmem [resolvable:$true] %s318_s12 }
  0x10   :  { %215 = vmatpush.bf16.msra.mxu1 %v442_v1  ;;  %v440_v5 = vld [vmem:[#allocation5 + $0x68] sm:$0xff]  ;;  %v450_v6 = vld [vmem:[#allocation7 + $0x38] sm:$0xff]  ;;  %v449_v7 = vld [vmem:[#allocation7 + $0x30] sm:$0xff] }
  0x11   :  { %298 = vmatpush.bf16.msra.mxu2 %v450_v6  ;;  %v431_v8 = vld [vmem:[#allocation5 + $0x20] sm:$0xff]  ;;  %v448_v10 = vld [vmem:[#allocation7 + $0x28] sm:$0xff]  ;;  %v430_v11 = vld [vmem:[#allocation5 + $0x18] sm:$0xff] }
  0x12   :  { %v439_v9 = vld [vmem:[#allocation5 + $0x60] sm:$0xff]  ;;  %v438_v12 = vld [vmem:[#allocation5 + $0x58] sm:$0xff]  ;;  %v429_v14 = vld [vmem:[#allocation5 + $0x10] sm:$0xff] }
  0x13   :  { %203 = vmatpush.bf16.msra.mxu0 %v433_v2  ;;  %v447_v13 = vld [vmem:[#allocation7 + $0x20] sm:$0xff]  ;;  %v437_v15 = vld [vmem:[#allocation5 + $0x50] sm:$0xff]  ;;  %v446_v16 = vld [vmem:[#allocation7 + $0x18] sm:$0xff] }
  0x14   :  { %216 = vmatpush.bf16.msra.mxu1 %v441_v3  ;;  %v428_v17 = vld [vmem:[#allocation5 + $0x8] sm:$0xff]  ;;  %v445_v19 = vld [vmem:[#allocation7 + $0x10] sm:$0xff]  ;;  %v427_v20 = vld [vmem:[#allocation5] sm:$0xff] }
  0x15   :  { %299 = vmatpush.bf16.msra.mxu2 %v449_v7  ;;  %v436_v18 = vld [vmem:[#allocation5 + $0x48] sm:$0xff]  ;;  %v435_v21 = vld [vmem:[#allocation5 + $0x40] sm:$0xff]  ;;  %v66_v22 = vld [vmem:[#allocation2] sm:$0xff] }
  0x16   :  { %v67_v23 = vld [vmem:[#allocation2 + $0x8] sm:$0xff]  ;;  %v68_v24 = vpack.c.bf16 %v66_v22, %v66_v22  ;;  %v444_v26 = vld [vmem:[#allocation7 + $0x8] sm:$0xff]  ;;  %v443_v27 = vld [vmem:[#allocation7] sm:$0xff] }
  0x17   :  { %204 = vmatpush.bf16.msra.mxu0 %v432_v4  ;;  %v69_v25 = vpack.c.bf16 %v67_v23, %v67_v23  ;;  %v457_v28 = vld [vmem:[%s617_s2] ss:$0 sm:$0xff]  ;;  %s320_s2 = sshll.u32 %s620_s5, 4  ;;  %s321_s2 = int_to_ptr.hbm [resolvable:$true] %s320_s2 }
  0x18   :  { %217 = vmatpush.bf16.msra.mxu1 %v440_v5  ;;  %v458_v37 = vld [vmem:[%s619_s4] ss:$0 sm:$0xff] }
  0x19   :  { %300 = vmatpush.bf16.msra.mxu2 %v448_v10 }
  0x1b   :  { %205 = vmatpush.bf16.msra.mxu0 %v431_v8 }
  0x1c   :  { %218 = vmatpush.bf16.msra.mxu1 %v439_v9 }
  0x1d   :  { %301 = vmatpush.bf16.msra.mxu2 %v447_v13 }
  0x1f   :  { %206 = vmatpush.bf16.msra.mxu0 %v430_v11 }
  0x20   :  { %219 = vmatpush.bf16.msra.mxu1 %v438_v12 }
  0x21   :  { %302 = vmatpush.bf16.msra.mxu2 %v446_v16 }
  0x23   :  { %207 = vmatpush.bf16.msra.mxu0 %v429_v14 }
  0x24   :  { %220 = vmatpush.bf16.msra.mxu1 %v437_v15 }
  0x25   :  { %303 = vmatpush.bf16.msra.mxu2 %v445_v19 }
  0x27   :  { %208 = vmatpush.bf16.msra.mxu0 %v428_v17 }
  0x28   :  { %221 = vmatpush.bf16.msra.mxu1 %v436_v18 }
  0x29   :  { %304 = vmatpush.bf16.msra.mxu2 %v444_v26 }
  0x2b   :  { %209 = vmatpush.bf16.msra.mxu0 %v427_v20 }
  0x2c   :  { %222 = vmatpush.bf16.msra.mxu1 %v435_v21 }
  0x2d   :  { %305 = vmatpush.bf16.msra.mxu2 %v443_v27 }
  0x2e   :  { %210 = vmatmul.bf16.vlgmr.msra.gmra.mxu0 %v68_v24 }
  0x2f   :  { %223 = vmatmul.bf16.vlgmr.msra.gmra.mxu1 %v69_v25 }
  0xab   :  { %v211_v29 = vpop.f32.mrf.mxu0 }
  0xac   :  { %v224_v30 = vpop.f32.mrf.mxu1  ;;  %v212_v31 = vadd.f32 %v457_v28, %v211_v29 }
  0xae   :  { %v225_v32 = vadd.f32 %v224_v30, %v212_v31 }
  0xb0   :  { %v228_v33 = vmax.f32 %v225_v32, 0.0 }
  0xb2   :  { %v229_v34 = vpack.c.bf16 %v228_v33, %v228_v33 }
  0xb3   :  { %v213_v35 = vpop.f32.mrf.mxu0 }
  0xb4   :  { %v226_v36 = vpop.f32.mrf.mxu1  ;;  %306 = vmatmul.bf16.vlgmr.msra.gmra.mxu2 %v229_v34 }
 0x137   :  { %v307_v38 = vpop.f32.mrf.mxu2 }
 0x138   :  { %v308_v39 = vadd.f32 %v458_v37, %v307_v38 }
 0x13a   :  { %v311_v40 = vpack.c.bf16 %v308_v39, %v308_v39 }
 0x13c   :  { %312 = vst [vmem:[#allocation8] sm:$0xf] %v311_v40 }
 0x13d   :  { %323 = dma.vmem_to_hbm [thread:$0]  %s319_s12, 64, %s321_s2, [#allocation4]  }
 0x13f   :  { %v309_v41 = vpop.f32.mrf.mxu2 }
 0x140   :  { %559 = dma.done.wait [#allocation4], 64  }
 0x141   :  { %560 = vsyncadd [#allocation4], 4294967232 }
 0x142   :  { %328 = vsyncpa [#allocation3], 1 }
 0x143   :  { %329 = vsyncpa [#allocation6], 1 }
 0x144   :  { %330 = vsyncpa [#allocation4], 1 }

</bundles_post_ra>
